<compile_context>
chip_gen: v6e
topology: v6e:2x2x1
jax: 0.10.0
libtpu: 0.0.40
codegen_flags: <defaults>
</compile_context>

<pallas_src>
import jax
import jax.numpy as jnp
from jax import lax
from jax.experimental import pallas as pl
from jax.experimental.pallas import tpu as pltpu


_LANE = 128
_SUBLANE = 8
_NEG_INF = -1e30  # finite "minus infinity" for padded class columns


def _round_up(x, m):
    return ((x + m - 1) // m) * m


def _attn_classifier_kernel(x_ref, w_ref, b_ref, o_ref):
    # x_ref: (TB, H)      activation tile (compute dtype, e.g. bf16)
    # w_ref: (O_pad, H)   weight in PyTorch layout, VMEM-resident across tiles
    # b_ref: (1, O_pad)   f32 bias (padded classes carry -1e30)
    # o_ref: (TB, O_pad)  log-probabilities
    #
    # logits = x @ W^T + b.  Contract dim 1 of both operands so no transpose
    # of the weight is ever materialized (the MXU takes the transposed RHS
    # natively).  Accumulate in f32.
    logits = lax.dot_general(
        x_ref[...], w_ref[...],
        dimension_numbers=(((1,), (1,)), ((), ())),
        preferred_element_type=jnp.float32,
    ) + b_ref[...]

    # Numerically-stable log-softmax over the class axis, entirely in f32.
    # Padded class columns have logits ~ -1e30, so exp underflows to 0 and
    # they do not perturb the normalizer; padded batch rows are sliced off
    # by the wrapper.
    m = jnp.max(logits, axis=-1, keepdims=True)
    shifted = logits - m
    lse = jnp.log(jnp.sum(jnp.exp(shifted), axis=-1, keepdims=True))
    o_ref[...] = (shifted - lse).astype(o_ref.dtype)


def attn_classifier_forward(encoder_hidden, encoder_outputs, attn_mask,
                            out_weight, out_bias, *,
                            compute_dtype=jnp.bfloat16,
                            block_b=512,
                            vmem_budget_bytes=24 * 1024 * 1024):
    """Pallas implementation of AttnClassifier.forward.

    encoder_hidden: (1, B, H)   GRU-style hidden state
    encoder_outputs, attn_mask: unused (matching the PyTorch forward)
    out_weight: (O, H)  PyTorch Linear weight (kept in this layout, no .T)
    out_bias:   (O,)    PyTorch Linear bias
    returns:    (B, O)  log-probabilities
    """
    del encoder_outputs, attn_mask  # unused by the reference forward

    x = jnp.squeeze(encoder_hidden, axis=0)          # (B, H)
    B, H = x.shape
    O = out_weight.shape[0]
    out_dtype = x.dtype

    # ---- class-axis padding: lane-dense output (multiple of 128 lanes) ----
    O_pad = _round_up(max(O, _LANE), _LANE)
    w = out_weight.astype(compute_dtype)             # stays (O, H): no transpose
    if O_pad != O:
        w = jnp.pad(w, ((0, O_pad - O), (0, 0)))
    b = jnp.full((1, O_pad), _NEG_INF, jnp.float32)
    b = b.at[0, :O].set(out_bias.astype(jnp.float32))

    # ---- batch tile size: largest multiple of 8 fitting the VMEM budget ----
    cbytes = jnp.dtype(compute_dtype).itemsize
    obytes = jnp.dtype(out_dtype).itemsize

    def _vmem_estimate(tb):
        # double-buffered activation + output tiles, (conservatively) doubled
        # resident weight/bias buffers.
        return (2 * tb * H * cbytes
                + 2 * tb * O_pad * obytes
                + 2 * O_pad * H * cbytes
                + 2 * O_pad * 4)

    tb = max(_SUBLANE, min(_round_up(block_b, _SUBLANE), _round_up(B, _SUBLANE)))
    while tb > _SUBLANE and _vmem_estimate(tb) > vmem_budget_bytes:
        tb = max(_SUBLANE, _round_up(tb // 2, _SUBLANE))

    B_pad = _round_up(B, tb)
    x_c = x.astype(compute_dtype)
    if B_pad != B:
        x_c = jnp.pad(x_c, ((0, B_pad - B), (0, 0)))

    grid = (B_pad // tb,)

    cost = pl.CostEstimate(
        flops=2 * B_pad * H * O_pad,
        transcendentals=2 * B_pad * O_pad,            # exp + log
        bytes_accessed=(B_pad * H * cbytes            # activations
                        + O_pad * H * cbytes          # weight
                        + O_pad * 4                   # bias
                        + B_pad * O_pad * obytes),    # output
    )

    out_padded = pl.pallas_call(
        _attn_classifier_kernel,
        out_shape=jax.ShapeDtypeStruct((B_pad, O_pad), out_dtype),
        grid=grid,
        in_specs=[
            pl.BlockSpec((tb, H), lambda i: (i, 0)),       # x: tiled over batch
            pl.BlockSpec((O_pad, H), lambda i: (0, 0)),    # weight: resident
            pl.BlockSpec((1, O_pad), lambda i: (0, 0)),    # bias: resident
        ],
        out_specs=pl.BlockSpec((tb, O_pad), lambda i: (i, 0)),
        compiler_params=pltpu.CompilerParams(
            dimension_semantics=("parallel",),
            vmem_limit_bytes=32 * 1024 * 1024,
        ),
        cost_estimate=cost,
    )(x_c, w, b)

    # Strip batch padding and padded class columns.
    return out_padded[:B, :O]


def _reference_forward(encoder_hidden, out_weight, out_bias,
                       compute_dtype=jnp.float32):
    x = jnp.squeeze(encoder_hidden, axis=0)
    logits = jnp.dot(x.astype(compute_dtype),
                     out_weight.astype(compute_dtype).T,
                     preferred_element_type=jnp.float32)
    logits = logits + out_bias.astype(jnp.float32)
    return jax.nn.log_softmax(logits, axis=1)


if __name__ == "__main__":
    key = jax.random.PRNGKey(0)
    k1, k2, k3, k4, k5 = jax.random.split(key, 5)

    batch = 2
    seq = 8
    hidden_size = 32
    output_size = 16

    # Deterministic "module parameters" (nn.Linear(hidden_size, output_size)).
    bound = 1.0 / jnp.sqrt(hidden_size)
    out_weight = jax.random.uniform(k1, (output_size, hidden_size),
                                    jnp.float32, -bound, bound)
    out_bias = jax.random.uniform(k2, (output_size,),
                                  jnp.float32, -bound, bound)

    # Inputs matching the PyTorch forward signature.
    encoder_hidden = jax.random.normal(k3, (1, batch, hidden_size), jnp.float32)
    encoder_outputs = jax.random.normal(k4, (seq, batch, hidden_size), jnp.float32)
    attn_mask = jax.random.uniform(k5, (batch, seq)) > 0.5  # unused, as in PyTorch

    out = attn_classifier_forward(encoder_hidden, encoder_outputs, attn_mask,
                                  out_weight, out_bias)
    out = jax.block_until_ready(out)
    assert out.shape == (batch, output_size)

    # Exact check against a reference using the same bf16-operand / f32-accum
    # matmul as the kernel.
    ref_bf16 = _reference_forward(encoder_hidden, out_weight, out_bias,
                                  compute_dtype=jnp.bfloat16)
    assert jnp.allclose(out, ref_bf16, atol=2e-5, rtol=2e-5), (
        jnp.max(jnp.abs(out - ref_bf16)))

    # Sanity check against the full-f32 PyTorch-equivalent reference
    # (tolerance accounts for bf16 MXU operands).
    ref_f32 = _reference_forward(encoder_hidden, out_weight, out_bias)
    assert jnp.allclose(out, ref_f32, atol=2e-2, rtol=2e-2), (
        jnp.max(jnp.abs(out - ref_f32)))

    print("KERNEL_OK")
</pallas_src>

<mosaic_0001>
module attributes {stable_mosaic.version = 11 : i64} {
  func.func @_attn_classifier_kernel(%arg0: i32, %arg1: memref<8x32xbf16, #tpu.memory_space<vmem>>, %arg2: memref<128x32xbf16, #tpu.memory_space<vmem>>, %arg3: memref<1x128xf32, #tpu.memory_space<vmem>>, %arg4: memref<8x128xf32, #tpu.memory_space<vmem>>) attributes {dimension_semantics = [#tpu.dimension_semantics<parallel>], iteration_bounds = array<i64: 1>, scalar_prefetch = 0 : i64, scratch_operands = 0 : i64, tpu.core_type = #tpu.core_type<tc>, window_params = [{transform_indices = @transform_0, window_bounds = array<i64: 8, 32>}, {pipeline_mode = #tpu.pipeline_mode<synchronous>, transform_indices = @transform_1, window_bounds = array<i64: 128, 32>}, {pipeline_mode = #tpu.pipeline_mode<synchronous>, transform_indices = @transform_2, window_bounds = array<i64: 1, 128>}, {transform_indices = @transform_3, window_bounds = array<i64: 8, 128>}]} {
    %c0 = arith.constant 0 : index
    %c0_0 = arith.constant 0 : index
    %0 = vector.load %arg1[%c0, %c0_0] : memref<8x32xbf16, #tpu.memory_space<vmem>>, vector<8x32xbf16>
    %c0_1 = arith.constant 0 : index
    %c0_2 = arith.constant 0 : index
    %1 = vector.load %arg2[%c0_1, %c0_2] : memref<128x32xbf16, #tpu.memory_space<vmem>>, vector<128x32xbf16>
    %cst = arith.constant dense<0.000000e+00> : vector<8x128xf32>
    %2 = tpu.matmul %0, %1, %cst {dimension_numbers = #tpu.dot_dimension_numbers<[1], [1], [0], [0], [0, 0, 1, 0], [], []>} : vector<8x32xbf16>, vector<128x32xbf16>, vector<8x128xf32> -> vector<8x128xf32>
    %c0_3 = arith.constant 0 : index
    %c0_4 = arith.constant 0 : index
    %3 = vector.load %arg3[%c0_3, %c0_4] : memref<1x128xf32, #tpu.memory_space<vmem>>, vector<1x128xf32>
    %4 = vector.broadcast %3 : vector<1x128xf32> to vector<8x128xf32>
    %5 = arith.addf %2, %4 : vector<8x128xf32>
    %cst_5 = arith.constant dense<0xFF800000> : vector<8xf32>
    %6 = vector.multi_reduction <maximumf>, %5, %cst_5 [1] : vector<8x128xf32> to vector<8xf32>
    %7 = vector.shape_cast %6 : vector<8xf32> to vector<8x1xf32>
    %8 = vector.broadcast %7 : vector<8x1xf32> to vector<8x128xf32>
    %9 = arith.subf %5, %8 : vector<8x128xf32>
    %10 = math.exp %9 : vector<8x128xf32>
    %cst_6 = arith.constant dense<0.000000e+00> : vector<8xf32>
    %11 = vector.multi_reduction <add>, %10, %cst_6 [1] : vector<8x128xf32> to vector<8xf32>
    %12 = vector.shape_cast %11 : vector<8xf32> to vector<8x1xf32>
    %13 = math.log %12 : vector<8x1xf32>
    %14 = vector.broadcast %13 : vector<8x1xf32> to vector<8x128xf32>
    %15 = arith.subf %9, %14 : vector<8x128xf32>
    %c0_7 = arith.constant 0 : index
    %c0_8 = arith.constant 0 : index
    %16 = vector.load %arg4[%c0_7, %c0_8] : memref<8x128xf32, #tpu.memory_space<vmem>>, vector<8x128xf32>
    tpu.vector_store %arg4[%c0_7, %c0_8], %15 {strides = array<i32>} : memref<8x128xf32, #tpu.memory_space<vmem>>, vector<8x128xf32>,
    return
  }
  func.func @transform_0(%arg0: i32) -> (i32, i32) {
    %c0_i32 = arith.constant 0 : i32
    %c0_i32_0 = arith.constant 0 : i32
    return %arg0, %c0_i32 : i32, i32
  }
  func.func @transform_1(%arg0: i32) -> (i32, i32) {
    %c0_i32 = arith.constant 0 : i32
    %c0_i32_0 = arith.constant 0 : i32
    %c0_i32_1 = arith.constant 0 : i32
    return %c0_i32, %c0_i32_0 : i32, i32
  }
  func.func @transform_2(%arg0: i32) -> (i32, i32) {
    %c0_i32 = arith.constant 0 : i32
    %c0_i32_0 = arith.constant 0 : i32
    %c0_i32_1 = arith.constant 0 : i32
    return %c0_i32, %c0_i32_0 : i32, i32
  }
  func.func @transform_3(%arg0: i32) -> (i32, i32) {
    %c0_i32 = arith.constant 0 : i32
    %c0_i32_0 = arith.constant 0 : i32
    return %arg0, %c0_i32 : i32, i32
  }
}

</mosaic_0001>

<bundles_post_ra>
// kernel: tpu_custom_call.1
= control target key start
LH: loop header
LB: loop body
LE: loop exit
PB: predicated region body
PF: predicated region fallthrough
CT: control target
= control target key end

     0   :  { %v249_v1 = vmov 0.0   ;;  %vm80_vm0 = vcmask 261120   ;;  %vm250_vm1 = vmmov 0   ;;  %s314_s0 = inlined_call_operand.vmem [shape: bf16[8,32], index: 0, kind: input, shape index: {}]   ;;  %s315_s1 = inlined_call_operand.vmem [shape: bf16[128,32], index: 1, kind: input, shape index: {}]   ;;  %s316_s2 = inlined_call_operand.vmem [shape: f32[1,128], index: 2, kind: input, shape index: {}]   ;;  %s317_s3 = inlined_call_operand.hbm [shape: f32[8,128], index: 3, kind: output, shape index: {}]  }
   0x1   :  { %v215_v0 = vld [vmem:[%s315_s1 + $0x38] sm:$0xff]   ;;  %192 = vmatprep.subr.bf16.mxu0 %v249_v1  ;;  %v216_v3 = vld [vmem:[%s315_s1 + $0x30] sm:$0xff]   ;;  %208 = vmatprep.mubr.msk.bf16.mxu0 %vm250_vm1, %v249_v1 }
   0x2   :  { %v106_v2 = vsel %vm80_vm0, %v215_v0, 0  ;;  %v103_v4 = vsel %vm80_vm0, %v216_v3, 0 }
   0x3   :  { %193 = vmatpush3.bf16.xpose.msra.mxu0 %v106_v2 }
   0x4   :  { %194 = vmatprep.subr.bf16.mxu0 %v249_v1 }
   0x5   :  { %8 = vsyncpa [#allocation3], 0  ;;  %v217_v5 = vld [vmem:[%s315_s1 + $0x28] sm:$0xff]   ;;  %v218_v7 = vld [vmem:[%s315_s1 + $0x20] sm:$0xff]  }
   0x6   :  { %v100_v6 = vsel %vm80_vm0, %v217_v5, 0  ;;  %v97_v8 = vsel %vm80_vm0, %v218_v7, 0  ;;  %v219_v9 = vld [vmem:[%s315_s1 + $0x18] sm:$0xff]   ;;  %v220_v11 = vld [vmem:[%s315_s1 + $0x10] sm:$0xff]   ;;  %v221_v13 = vld [vmem:[%s315_s1 + $0x8] sm:$0xff]  }
   0x7   :  { %v94_v10 = vsel %vm80_vm0, %v219_v9, 0  ;;  %v91_v12 = vsel %vm80_vm0, %v220_v11, 0  ;;  %v88_v14 = vsel %vm80_vm0, %v221_v13, 0  ;;  %v222_v15 = vld [vmem:[%s315_s1] sm:$0xff]  }
   0x8   :  { %v85_v16 = vsel %vm80_vm0, %v222_v15, 0  ;;  %v16_v17 = vld [vmem:[%s314_s0] sm:$0xf]  ;;  %s251_s0 = smov [#allocation2]  }
   0x9   :  { %v173_v18 = vld [vmem:[%s316_s2] ss:$0 sm:$0xff]  ;;  %s165_s1 = sshll.u32 %s251_s0, 4  ;;  %s166_s1 = int_to_ptr.vmem [resolvable:$true] %s165_s1 }
   0xa   :  { %s227_s2 = scalar_lea.vmem %s166_s1, 128  ;;  %p232_p1 = scmp.lt.s32.totalorder %s166_s1, %s166_s1 }
   0xb   :  { %195 = vmatpush3.bf16.xpose.msra.mxu0 %v103_v4  ;;  %p228_p0 = scmp.ne.s32.totalorder %s166_s1, %s227_s2  ;;  %p233_p2 = scmp.lt.s32.totalorder %s227_s2, %s227_s2 }
   0xc   :  { %196 = vmatprep.subr.bf16.mxu0 %v249_v1 }
   0xd   :  { %p234_p3 = por %p233_p2, %p232_p1 }
   0xf   :  { %p235_p4 = pnand %p234_p3, %p228_p0 }
  0x13   :  { %197 = vmatpush3.bf16.xpose.msra.mxu0 %v100_v6 }
  0x14   :  { %198 = vmatprep.subr.bf16.mxu0 %v249_v1 }
  0x1b   :  { %199 = vmatpush3.bf16.xpose.msra.mxu0 %v97_v8 }
  0x1c   :  { %200 = vmatprep.subr.bf16.mxu0 %v249_v1 }
  0x23   :  { %201 = vmatpush3.bf16.xpose.msra.mxu0 %v94_v10 }
  0x24   :  { %202 = vmatprep.subr.bf16.mxu0 %v249_v1 }
  0x2b   :  { %203 = vmatpush3.bf16.xpose.msra.mxu0 %v91_v12 }
  0x2c   :  { %204 = vmatprep.subr.bf16.mxu0 %v249_v1 }
  0x33   :  { %205 = vmatpush3.bf16.xpose.msra.mxu0 %v88_v14 }
  0x34   :  { %206 = vmatprep.subr.bf16.mxu0 %v249_v1 }
  0x3b   :  { %207 = vmatpush3.bf16.xpose.msra.mxu0 %v85_v16 }
  0x42   :  { %209 = vmatmul.mubr.msk.bf16.vlgmr.msra.gmra.mxu0 %vm80_vm0, %v16_v17 }
 0x102   :  { %v142_v19 = vpop.f32.mrf.mxu0 }
 0x103   :  { %v143_v20 = vadd.f32 %v173_v18, %v142_v19 }
 0x104   :  { %v210_v21 = vpop.f32.mrf.mxu0 }
 0x105   :  { %148 = vmax.xlane.f32.xlu0 %v143_v20 }
 0x106   :  { %v145_v22 = vpop.f32.mrf.mxu0 }
 0x108   :  { %v211_v23 = vpop.f32.mrf.mxu0 }
 0x18e   :  { %v149_v24 = vpop.xlane.xlu0 %148 }
 0x18f   :  { %v150_v25 = vsub.f32 %v143_v20, %v149_v24 }
 0x191   :  { %v151_v26 = vmul.f32 1.442695, %v150_v25 }
 0x193   :  { %223 = vpow2.f32 %v151_v26 }
 0x1a0   :  { %v224_v27 = vpop.eup %223 }
 0x1a1   :  { %153 = vadd.xlane.f32.xlu0 %v224_v27 }
 0x22a   :  { %v154_v28 = vpop.xlane.xlu0 %153 }
 0x22b   :  { %225 = vlog2.f32 %v154_v28 }
 0x238   :  { %v226_v29 = vpop.eup %225 }
 0x239   :  { %v156_v30 = vmul.f32 0.6931472, %v226_v29 }
 0x23b   :  { %v157_v31 = vsub.f32 %v150_v25, %v156_v30 }
 0x23d   :  { %158 = vst [vmem:[#allocation2] sm:$0xff] %v157_v31 }
 0x23e   :  { %238 = shalt.err (!%p235_p4)
}
 0x23f   :  { %168 = dma.vmem_to_hbm [thread:$0]  %s166_s1, 128, %s317_s3, [#allocation3]  }
 0x240   :  { %247 = dma.done.wait [#allocation3], 128  }
 0x241   :  { %248 = vsyncadd [#allocation3], 4294967168 }
 0x242   :  { %172 = vsyncpa [#allocation3], 1 }

</bundles_post_ra>
